<compile_context>
chip_gen: v5e
topology: v5e:2x2
jax: 0.10.0
libtpu: 0.0.40
codegen_flags: <defaults>
</compile_context>

<pallas_src>
import functools

import jax
import jax.numpy as jnp
from jax.experimental import pallas as pl
from jax.experimental.pallas import tpu as pltpu


def _round_up(x, m):
    return (x + m - 1) // m * m


def _tile_plan(d):
    """Pick (Dp, TK, TD): padded feature dim, encoder K tile, decoder output-column tile.

    Dp is always a multiple of 128 and of both tiles. Small problems collapse to a single
    inner grid step (TK = TD = Dp)."""
    d128 = _round_up(max(d, 1), 128)
    if d128 <= 2048:
        return d128, d128, d128          # whole problem in one inner step
    dp = _round_up(d, 2048)
    return dp, 2048, 1024                # 2048 | dp and 1024 | dp by construction


def _vmem_budget_bytes(tb, tk, td, lp):
    b = 0
    b += 2 * tb * tk * 2          # x tile (bf16, double-buffered)
    b += 2 * tk * lp * 2          # encoder weight tile
    b += 2 * 1 * lp * 4           # encoder bias
    b += 2 * lp * td * 2          # decoder weight tile
    b += 2 * 1 * td * 4           # decoder bias tile
    b += 2 * tb * lp * 4          # encoded output block
    b += 2 * tb * td * 4          # decoded output tile
    b += tb * lp * 4 + tb * lp * 2  # scratch: f32 accumulator + bf16 activations
    return b


def _make_kernel(nk):
    """Fused encoder+decoder kernel. grid = (num_batch_tiles, nk + nd - 1).

    Inner axis t: steps [0, nk-1] accumulate the encoder contraction over K chunks; at
    t == nk-1 the encoder finishes (bias + ReLU, encoded output + bf16 scratch written) and
    the decoder starts; steps [nk-1, nk+nd-2] each produce one lane-dense decoder column tile.
    """
    last_k = nk - 1

    def kernel(x_ref, we_ref, be_ref, wd_ref, bd_ref, enc_ref, dec_ref,
               acc_ref, h_ref):
        t = pl.program_id(1)

        if nk == 1:
            # Single-shot encoder: no accumulator round-trip needed.
            @pl.when(t == 0)
            def _():
                h = jnp.dot(x_ref[...], we_ref[...],
                            preferred_element_type=jnp.float32) + be_ref[...]
                h = jnp.maximum(h, 0.0)
                h_ref[...] = h.astype(h_ref.dtype)
                enc_ref[...] = h
        else:
            @pl.when(t == 0)
            def _():
                acc_ref[...] = jnp.zeros_like(acc_ref)

            @pl.when(t <= last_k)
            def _():
                acc_ref[...] += jnp.dot(x_ref[...], we_ref[...],
                                        preferred_element_type=jnp.float32)

            @pl.when(t == last_k)
            def _():
                h = jnp.maximum(acc_ref[...] + be_ref[...], 0.0)
                h_ref[...] = h.astype(h_ref.dtype)
                enc_ref[...] = h

        # Decoder: Linear(Lp -> TD) + sigmoid on this output-column tile (bf16 MXU, f32 acc).
        @pl.when(t >= last_k)
        def _():
            y = jnp.dot(h_ref[...], wd_ref[...],
                        preferred_element_type=jnp.float32) + bd_ref[...]
            # sigmoid(y) == 0.5 * tanh(0.5 * y) + 0.5 : one EUP push + VPU fma.
            dec_ref[...] = 0.5 * jnp.tanh(0.5 * y) + 0.5

    return kernel


def prepare_autoencoder_params(w_enc, b_enc, w_dec, b_dec):
    """One-time padding / casting of the parameters (hoisted out of the per-call path)."""
    D, L = w_enc.shape
    Dp, _, _ = _tile_plan(D)
    Lp = _round_up(max(L, 1), 128)
    we_p = jnp.zeros((Dp, Lp), jnp.bfloat16).at[:D, :L].set(w_enc.astype(jnp.bfloat16))
    be_p = jnp.zeros((1, Lp), jnp.float32).at[0, :L].set(b_enc.astype(jnp.float32))
    wd_p = jnp.zeros((Lp, Dp), jnp.bfloat16).at[:L, :D].set(w_dec.astype(jnp.bfloat16))
    bd_p = jnp.zeros((1, Dp), jnp.float32).at[0, :D].set(b_dec.astype(jnp.float32))
    return we_p, be_p, wd_p, bd_p


@functools.partial(jax.jit, static_argnames=("latent_dim",))
def autoencoder_forward(x_nchw, we_p, be_p, wd_p, bd_p, *, latent_dim):
    """Fused auto-encoder forward.

    x_nchw: [B, C, H, W] f32.  Pre-padded params from `prepare_autoencoder_params`.
    Returns (encoded [B, L], decoded [B, C, H, W]) matching the PyTorch forward.
    """
    B, C, H, W = x_nchw.shape
    D = C * H * W
    L = latent_dim

    Dp, TK, TD = _tile_plan(D)
    Lp = we_p.shape[1]
    assert we_p.shape == (Dp, Lp) and wd_p.shape == (Lp, Dp)
    assert be_p.shape == (1, Lp) and bd_p.shape == (1, Dp)

    # Sublane-aligned batch tile; 256 fills the 256-wide MXU on v6e/v7x for big batches.
    TB = 256 if B >= 256 else min(128, _round_up(B, 8))
    Bp = _round_up(B, TB)
    nb = Bp // TB
    nk = Dp // TK
    nd = Dp // TD
    n_inner = nk + nd - 1
    last_k = nk - 1

    # Per-call input padding (the only per-call repack left).
    x_p = jnp.zeros((Bp, Dp), jnp.bfloat16).at[:B, :D].set(
        x_nchw.reshape(B, D).astype(jnp.bfloat16))

    budget = _vmem_budget_bytes(TB, TK, TD, Lp)
    vmem_limit = int(min(64 * 2**20, max(int(budget * 1.5), 32 * 2**20)))

    cost = pl.CostEstimate(
        flops=4 * Bp * Dp * Lp,                       # encoder + decoder matmuls
        transcendentals=Bp * Dp,                      # one tanh per decoded element
        bytes_accessed=(
            Bp * Dp * 2                               # x (streamed once)
            + nb * Dp * Lp * 2                        # encoder weight, re-streamed per batch tile
            + nb * Lp * 4                             # encoder bias
            + nb * Lp * Dp * 2                        # decoder weight, re-streamed per batch tile
            + nb * Dp * 4                             # decoder bias
            + Bp * Lp * 4                             # encoded out
            + Bp * Dp * 4                             # decoded out
        ),
    )

    encoded_p, decoded_p = pl.pallas_call(
        _make_kernel(nk),
        out_shape=(
            jax.ShapeDtypeStruct((Bp, Lp), jnp.float32),
            jax.ShapeDtypeStruct((Bp, Dp), jnp.float32),
        ),
        grid_spec=pltpu.PrefetchScalarGridSpec(
            num_scalar_prefetch=0,
            grid=(nb, n_inner),
            in_specs=[
                # x: K chunk during encoder phase, then held (no re-DMA) during decoder phase.
                pl.BlockSpec((TB, TK), lambda i, t: (i, jnp.minimum(t, last_k))),
                # encoder weight K chunk.
                pl.BlockSpec((TK, Lp), lambda i, t: (jnp.minimum(t, last_k), 0)),
                # encoder bias (resident).
                pl.BlockSpec((1, Lp), lambda i, t: (0, 0)),
                # decoder weight / bias column tiles (held at tile 0 during encoder phase).
                pl.BlockSpec((Lp, TD), lambda i, t: (0, jnp.maximum(t - last_k, 0))),
                pl.BlockSpec((1, TD), lambda i, t: (0, jnp.maximum(t - last_k, 0))),
            ],
            out_specs=(
                pl.BlockSpec((TB, Lp), lambda i, t: (i, 0)),                          # encoded
                pl.BlockSpec((TB, TD), lambda i, t: (i, jnp.maximum(t - last_k, 0))),  # decoded
            ),
            scratch_shapes=[
                pltpu.VMEM((TB, Lp), jnp.float32),    # f32 encoder accumulator
                pltpu.VMEM((TB, Lp), jnp.bfloat16),   # bf16 encoded acts for the decoder MXU
            ],
        ),
        compiler_params=pltpu.CompilerParams(
            dimension_semantics=("parallel", "arbitrary"),
            vmem_limit_bytes=vmem_limit,
        ),
        cost_estimate=cost,
    )(x_p, we_p, be_p, wd_p, bd_p)

    encoded = encoded_p[:B, :L]
    decoded = decoded_p[:B, :D].reshape(B, C, H, W)
    return encoded, decoded


def _reference_forward(x_nchw, w_enc, b_enc, w_dec, b_dec, dtype):
    """Plain-JAX reference; `dtype` controls the matmul operand precision."""
    B = x_nchw.shape[0]
    x = x_nchw.reshape(B, -1).astype(dtype)
    h = jnp.maximum(
        jnp.dot(x, w_enc.astype(dtype), preferred_element_type=jnp.float32) + b_enc, 0.0)
    y = jax.nn.sigmoid(
        jnp.dot(h.astype(dtype), w_dec.astype(dtype),
                preferred_element_type=jnp.float32) + b_dec)
    return h, y.reshape(x_nchw.shape)


if __name__ == "__main__":
    # Deterministic parameter / input construction (no checkpoint loading).
    key = jax.random.PRNGKey(0)
    k_x, k_we, k_be, k_wd, k_bd = jax.random.split(key, 5)

    B, C, H, W = 2, 4, 16, 16     # NCHW input, as the PyTorch module would receive
    D = C * H * W                 # 1024 flattened features
    L = 32                        # latent dim

    x = jax.random.normal(k_x, (B, C, H, W), dtype=jnp.float32)
    w_enc = jax.random.normal(k_we, (D, L), dtype=jnp.float32) * 0.02
    b_enc = jax.random.normal(k_be, (L,), dtype=jnp.float32) * 0.02
    w_dec = jax.random.normal(k_wd, (L, D), dtype=jnp.float32) * 0.02
    b_dec = jax.random.normal(k_bd, (D,), dtype=jnp.float32) * 0.02

    # One-time weight pad/cast (hoisted out of the per-call path).
    we_p, be_p, wd_p, bd_p = prepare_autoencoder_params(w_enc, b_enc, w_dec, b_dec)
    jax.block_until_ready((we_p, be_p, wd_p, bd_p))

    encoded, decoded = autoencoder_forward(x, we_p, be_p, wd_p, bd_p, latent_dim=L)
    jax.block_until_ready((encoded, decoded))

    assert encoded.shape == (B, L) and decoded.shape == (B, C, H, W)

    # Check against a reference that mimics kernel numerics (bf16 operands, f32 acc).
    ref_enc_bf, ref_dec_bf = _reference_forward(x, w_enc, b_enc, w_dec, b_dec, jnp.bfloat16)
    assert jnp.allclose(encoded, ref_enc_bf, atol=2e-3, rtol=2e-3)
    assert jnp.allclose(decoded, ref_dec_bf, atol=2e-3, rtol=2e-3)

    # Loose check against the full-f32 semantics of the original module.
    ref_enc_f32, ref_dec_f32 = _reference_forward(x, w_enc, b_enc, w_dec, b_dec, jnp.float32)
    assert jnp.allclose(encoded, ref_enc_f32, atol=5e-2, rtol=5e-2)
    assert jnp.allclose(decoded, ref_dec_f32, atol=5e-2, rtol=5e-2)

    print("KERNEL_OK")
</pallas_src>

<mosaic_0001>
module attributes {stable_mosaic.version = 11 : i64} {
  func.func @kernel(%arg0: i32, %arg1: i32, %arg2: memref<8x1024xbf16, #tpu.memory_space<vmem>>, %arg3: memref<1024x128xbf16, #tpu.memory_space<vmem>>, %arg4: memref<1x128xf32, #tpu.memory_space<vmem>>, %arg5: memref<128x1024xbf16, #tpu.memory_space<vmem>>, %arg6: memref<1x1024xf32, #tpu.memory_space<vmem>>, %arg7: memref<8x128xf32, #tpu.memory_space<vmem>>, %arg8: memref<8x1024xf32, #tpu.memory_space<vmem>>, %arg9: memref<8x128xf32, #tpu.memory_space<vmem>>, %arg10: memref<8x128xbf16, #tpu.memory_space<vmem>>) attributes {dimension_semantics = [#tpu.dimension_semantics<parallel>, #tpu.dimension_semantics<arbitrary>], iteration_bounds = array<i64: 1, 1>, scalar_prefetch = 0 : i64, scratch_operands = 2 : i64, tpu.core_type = #tpu.core_type<tc>, window_params = [{transform_indices = @transform_0, window_bounds = array<i64: 8, 1024>}, {transform_indices = @transform_1, window_bounds = array<i64: 1024, 128>}, {pipeline_mode = #tpu.pipeline_mode<synchronous>, transform_indices = @transform_2, window_bounds = array<i64: 1, 128>}, {transform_indices = @transform_3, window_bounds = array<i64: 128, 1024>}, {transform_indices = @transform_4, window_bounds = array<i64: 1, 1024>}, {transform_indices = @transform_5, window_bounds = array<i64: 8, 128>}, {transform_indices = @transform_6, window_bounds = array<i64: 8, 1024>}]} {
    %c0_i32 = arith.constant 0 : i32
    %0 = arith.cmpi eq, %arg1, %c0_i32 : i32
    %1 = arith.extui %0 : i1 to i32
    %c0_i32_0 = arith.constant 0 : i32
    %2 = arith.cmpi ne, %1, %c0_i32_0 : i32
    scf.if %2 {
      %c0 = arith.constant 0 : index
      %c0_3 = arith.constant 0 : index
      %6 = vector.load %arg2[%c0, %c0_3] : memref<8x1024xbf16, #tpu.memory_space<vmem>>, vector<8x1024xbf16>
      %c0_4 = arith.constant 0 : index
      %c0_5 = arith.constant 0 : index
      %7 = vector.load %arg3[%c0_4, %c0_5] : memref<1024x128xbf16, #tpu.memory_space<vmem>>, vector<1024x128xbf16>
      %cst = arith.constant dense<0.000000e+00> : vector<8x128xf32>
      %8 = tpu.matmul %6, %7, %cst {dimension_numbers = #tpu.dot_dimension_numbers<[1], [0], [0], [1], [0, 0, 1, 1], [], []>} : vector<8x1024xbf16>, vector<1024x128xbf16>, vector<8x128xf32> -> vector<8x128xf32>
      %c0_6 = arith.constant 0 : index
      %c0_7 = arith.constant 0 : index
      %9 = vector.load %arg4[%c0_6, %c0_7] : memref<1x128xf32, #tpu.memory_space<vmem>>, vector<1x128xf32>
      %10 = vector.broadcast %9 : vector<1x128xf32> to vector<8x128xf32>
      %11 = arith.addf %8, %10 : vector<8x128xf32>
      %cst_8 = arith.constant 0.000000e+00 : f32
      %12 = vector.broadcast %cst_8 : f32 to vector<8x128xf32>
      %13 = arith.maximumf %11, %12 : vector<8x128xf32>
      %14 = arith.truncf %13 : vector<8x128xf32> to vector<8x128xbf16>
      %c0_9 = arith.constant 0 : index
      %c0_10 = arith.constant 0 : index
      %15 = vector.load %arg10[%c0_9, %c0_10] : memref<8x128xbf16, #tpu.memory_space<vmem>>, vector<8x128xbf16>
      tpu.vector_store %arg10[%c0_9, %c0_10], %14 {strides = array<i32>} : memref<8x128xbf16, #tpu.memory_space<vmem>>, vector<8x128xbf16>,
      %c0_11 = arith.constant 0 : index
      %c0_12 = arith.constant 0 : index
      %16 = vector.load %arg7[%c0_11, %c0_12] : memref<8x128xf32, #tpu.memory_space<vmem>>, vector<8x128xf32>
      tpu.vector_store %arg7[%c0_11, %c0_12], %13 {strides = array<i32>} : memref<8x128xf32, #tpu.memory_space<vmem>>, vector<8x128xf32>,
    } else {
    }
    %c0_i32_1 = arith.constant 0 : i32
    %3 = arith.cmpi sge, %arg1, %c0_i32_1 : i32
    %4 = arith.extui %3 : i1 to i32
    %c0_i32_2 = arith.constant 0 : i32
    %5 = arith.cmpi ne, %4, %c0_i32_2 : i32
    scf.if %5 {
      %c0 = arith.constant 0 : index
      %c0_3 = arith.constant 0 : index
      %6 = vector.load %arg10[%c0, %c0_3] : memref<8x128xbf16, #tpu.memory_space<vmem>>, vector<8x128xbf16>
      %c0_4 = arith.constant 0 : index
      %c0_5 = arith.constant 0 : index
      %7 = vector.load %arg5[%c0_4, %c0_5] : memref<128x1024xbf16, #tpu.memory_space<vmem>>, vector<128x1024xbf16>
      %cst = arith.constant dense<0.000000e+00> : vector<8x1024xf32>
      %8 = tpu.matmul %6, %7, %cst {dimension_numbers = #tpu.dot_dimension_numbers<[1], [0], [0], [1], [0, 0, 1, 1], [], []>} : vector<8x128xbf16>, vector<128x1024xbf16>, vector<8x1024xf32> -> vector<8x1024xf32>
      %c0_6 = arith.constant 0 : index
      %c0_7 = arith.constant 0 : index
      %9 = vector.load %arg6[%c0_6, %c0_7] : memref<1x1024xf32, #tpu.memory_space<vmem>>, vector<1x1024xf32>
      %10 = vector.broadcast %9 : vector<1x1024xf32> to vector<8x1024xf32>
      %11 = arith.addf %8, %10 : vector<8x1024xf32>
      %cst_8 = arith.constant 5.000000e-01 : f32
      %12 = vector.broadcast %cst_8 : f32 to vector<8x1024xf32>
      %13 = arith.mulf %12, %11 : vector<8x1024xf32>
      %14 = math.tanh %13 : vector<8x1024xf32>
      %cst_9 = arith.constant 5.000000e-01 : f32
      %15 = vector.broadcast %cst_9 : f32 to vector<8x1024xf32>
      %16 = arith.mulf %15, %14 : vector<8x1024xf32>
      %cst_10 = arith.constant 5.000000e-01 : f32
      %17 = vector.broadcast %cst_10 : f32 to vector<8x1024xf32>
      %18 = arith.addf %16, %17 : vector<8x1024xf32>
      %c0_11 = arith.constant 0 : index
      %c0_12 = arith.constant 0 : index
      %19 = vector.load %arg8[%c0_11, %c0_12] : memref<8x1024xf32, #tpu.memory_space<vmem>>, vector<8x1024xf32>
      tpu.vector_store %arg8[%c0_11, %c0_12], %18 {strides = array<i32>} : memref<8x1024xf32, #tpu.memory_space<vmem>>, vector<8x1024xf32>,
    } else {
    }
    return
  }
  func.func @transform_0(%arg0: i32, %arg1: i32) -> (i32, i32) {
    %c0_i32 = arith.constant 0 : i32
    %0 = arith.minsi %arg1, %c0_i32 : i32
    %c0_i32_0 = arith.constant 0 : i32
    return %arg0, %0 : i32, i32
  }
  func.func @transform_1(%arg0: i32, %arg1: i32) -> (i32, i32) {
    %c0_i32 = arith.constant 0 : i32
    %0 = arith.minsi %arg1, %c0_i32 : i32
    %c0_i32_0 = arith.constant 0 : i32
    %c0_i32_1 = arith.constant 0 : i32
    return %0, %c0_i32_0 : i32, i32
  }
  func.func @transform_2(%arg0: i32, %arg1: i32) -> (i32, i32) {
    %c0_i32 = arith.constant 0 : i32
    %c0_i32_0 = arith.constant 0 : i32
    %c0_i32_1 = arith.constant 0 : i32
    return %c0_i32, %c0_i32_0 : i32, i32
  }
  func.func @transform_3(%arg0: i32, %arg1: i32) -> (i32, i32) {
    %c0_i32 = arith.constant 0 : i32
    %0 = arith.subi %arg1, %c0_i32 : i32
    %c0_i32_0 = arith.constant 0 : i32
    %1 = arith.maxsi %0, %c0_i32_0 : i32
    %c0_i32_1 = arith.constant 0 : i32
    %c0_i32_2 = arith.constant 0 : i32
    return %c0_i32_1, %1 : i32, i32
  }
  func.func @transform_4(%arg0: i32, %arg1: i32) -> (i32, i32) {
    %c0_i32 = arith.constant 0 : i32
    %0 = arith.subi %arg1, %c0_i32 : i32
    %c0_i32_0 = arith.constant 0 : i32
    %1 = arith.maxsi %0, %c0_i32_0 : i32
    %c0_i32_1 = arith.constant 0 : i32
    %c0_i32_2 = arith.constant 0 : i32
    return %c0_i32_1, %1 : i32, i32
  }
  func.func @transform_5(%arg0: i32, %arg1: i32) -> (i32, i32) {
    %c0_i32 = arith.constant 0 : i32
    %c0_i32_0 = arith.constant 0 : i32
    return %arg0, %c0_i32 : i32, i32
  }
  func.func @transform_6(%arg0: i32, %arg1: i32) -> (i32, i32) {
    %c0_i32 = arith.constant 0 : i32
    %0 = arith.subi %arg1, %c0_i32 : i32
    %c0_i32_0 = arith.constant 0 : i32
    %1 = arith.maxsi %0, %c0_i32_0 : i32
    %c0_i32_1 = arith.constant 0 : i32
    return %arg0, %1 : i32, i32
  }
}

</mosaic_0001>

<bundles_post_ra>
// kernel: autoencoder_forward.1
= control target key start
LH: loop header
LB: loop body
LE: loop exit
PB: predicated region body
PF: predicated region fallthrough
CT: control target
= control target key end

     0   :  { %12 = vsyncpa [#allocation5], 0  ;;  %s2094_s0 = inlined_call_operand.vmem [shape: bf16[8,1024], index: 0, kind: input, shape index: {}]   ;;  %s2095_s1 = inlined_call_operand.hbm [shape: bf16[1024,128], index: 1, kind: input, shape index: {}]   ;;  %s2096_s2 = inlined_call_operand.vmem [shape: f32[1,128], index: 2, kind: input, shape index: {}]   ;;  %s2097_s3 = inlined_call_operand.hbm [shape: bf16[128,1024], index: 3, kind: input, shape index: {}]   ;;  %s2098_s4 = inlined_call_operand.vmem [shape: f32[1,1024], index: 4, kind: input, shape index: {}]   ;;  %s2099_s5 = inlined_call_operand.vmem [shape: f32[8,128], index: 5, kind: output, shape index: {0}]   ;;  %s2100_s6 = inlined_call_operand.vmem [shape: f32[8,1024], index: 6, kind: output, shape index: {1}]  }
   0x1   :  { %s20_s23 = sshll.u32 %s2095_s1, 4  ;;  %s21_s23 = int_to_ptr.hbm [resolvable:$true] %s20_s23 }
   0x2   :  { %13 = vsyncpa [#allocation7], 0  ;;  %s1990_s24 = smov [#allocation4]   ;;  %s35_s28 = sshll.u32 %s2097_s3, 4  ;;  %s36_s28 = int_to_ptr.hbm [resolvable:$true] %s35_s28 }
   0x3   :  { %s22_s25 = sshll.u32 %s1990_s24, 4  ;;  %s1991_s29 = smov 64   ;;  %s23_s25 = int_to_ptr.vmem [resolvable:$true] %s22_s25 }
   0x4   :  { %s1992_s30 = smov 4   ;;  %s1993_s7 = smov [#allocation6]  }
   0x5   :  { %28 = dma.hbm_to_vmem [thread:$0]  %s21_s23, 8192, %s23_s25, [#allocation5], %s1991_s29, %s1991_s29, %s1992_s30  }
   0x6   :  { %s37_s8 = sshll.u32 %s1993_s7, 4  ;;  %s1994_s9 = smov 512   ;;  %s38_s8 = int_to_ptr.vmem [resolvable:$true] %s37_s8 }
   0x7   :  { %s1995_s10 = smov 32  }
   0x8   :  { %43 = dma.hbm_to_vmem [thread:$0]  %s36_s28, 8192, %s38_s8, [#allocation7], %s1994_s9, %s1994_s9, %s1995_s10  }
   0x9   :  { %1986 = dma.done.wait [#allocation5], 8192  }
   0xa   :  { %1987 = vsyncadd [#allocation5], 4294959104 }
   0xb   :  { %1988 = dma.done.wait [#allocation7], 8192  }
   0xc   :  { %1989 = vsyncadd [#allocation7], 4294959104  ;;  %v1794_v0 = vld [vmem:[#allocation4 + $0x38] sm:$0xff]  ;;  %v1793_v4 = vld [vmem:[#allocation4 + $0x30] sm:$0xff] }
   0xd   :  { %v1802_v1 = vld [vmem:[#allocation4 + $0x78] sm:$0xff]  ;;  %606 = vmatpush.bf16.msra.mxu0 %v1794_v0  ;;  %v1801_v5 = vld [vmem:[#allocation4 + $0x70] sm:$0xff]  ;;  %v1792_v8 = vld [vmem:[#allocation4 + $0x28] sm:$0xff] }
   0xe   :  { %v1810_v2 = vld [vmem:[#allocation4 + $0xb8] sm:$0xff]  ;;  %619 = vmatpush.bf16.msra.mxu1 %v1802_v1  ;;  %v1809_v6 = vld [vmem:[#allocation4 + $0xb0] sm:$0xff]  ;;  %v1800_v9 = vld [vmem:[#allocation4 + $0x68] sm:$0xff] }
   0xf   :  { %v1818_v3 = vld [vmem:[#allocation4 + $0xf8] sm:$0xff]  ;;  %632 = vmatpush.bf16.msra.mxu2 %v1810_v2  ;;  %v1817_v7 = vld [vmem:[#allocation4 + $0xf0] sm:$0xff]  ;;  %v1808_v10 = vld [vmem:[#allocation4 + $0xa8] sm:$0xff] }
  0x10   :  { %645 = vmatpush.bf16.msra.mxu3 %v1818_v3  ;;  %v1816_v11 = vld [vmem:[#allocation4 + $0xe8] sm:$0xff]  ;;  %v1791_v12 = vld [vmem:[#allocation4 + $0x20] sm:$0xff]  ;;  %v1790_v16 = vld [vmem:[#allocation4 + $0x18] sm:$0xff] }
  0x11   :  { %607 = vmatpush.bf16.msra.mxu0 %v1793_v4  ;;  %v1799_v13 = vld [vmem:[#allocation4 + $0x60] sm:$0xff]  ;;  %v1798_v17 = vld [vmem:[#allocation4 + $0x58] sm:$0xff]  ;;  %v1789_v20 = vld [vmem:[#allocation4 + $0x10] sm:$0xff] }
  0x12   :  { %620 = vmatpush.bf16.msra.mxu1 %v1801_v5  ;;  %v1807_v14 = vld [vmem:[#allocation4 + $0xa0] sm:$0xff]  ;;  %v1806_v18 = vld [vmem:[#allocation4 + $0x98] sm:$0xff]  ;;  %v1797_v21 = vld [vmem:[#allocation4 + $0x50] sm:$0xff] }
  0x13   :  { %633 = vmatpush.bf16.msra.mxu2 %v1809_v6  ;;  %v1815_v15 = vld [vmem:[#allocation4 + $0xe0] sm:$0xff]  ;;  %v1814_v19 = vld [vmem:[#allocation4 + $0xd8] sm:$0xff]  ;;  %v1805_v22 = vld [vmem:[#allocation4 + $0x90] sm:$0xff] }
  0x14   :  { %646 = vmatpush.bf16.msra.mxu3 %v1817_v7  ;;  %v1813_v23 = vld [vmem:[#allocation4 + $0xd0] sm:$0xff]  ;;  %v1788_v24 = vld [vmem:[#allocation4 + $0x8] sm:$0xff]  ;;  %v58_v29 = vld [vmem:[%s2094_s0] sm:$0xff] }
  0x15   :  { %608 = vmatpush.bf16.msra.mxu0 %v1792_v8  ;;  %v1796_v25 = vld [vmem:[#allocation4 + $0x48] sm:$0xff]  ;;  %v1787_v30 = vld [vmem:[#allocation4] sm:$0xff]  ;;  %v198_v33 = vunpack.c.l.b16 %v58_v29  ;;  %v199_v37 = vunpack.c.h.b16 %v58_v29  ;;  %v1826_v38 = vld [vmem:[#allocation4 + $0x138] sm:$0xff] }
  0x16   :  { %621 = vmatpush.bf16.msra.mxu1 %v1800_v9  ;;  %v1804_v26 = vld [vmem:[#allocation4 + $0x88] sm:$0xff]  ;;  %v1795_v31 = vld [vmem:[#allocation4 + $0x40] sm:$0xff]  ;;  %v1834_v39 = vld [vmem:[#allocation4 + $0x178] sm:$0xff] }
  0x17   :  { %634 = vmatpush.bf16.msra.mxu2 %v1808_v10  ;;  %v1812_v27 = vld [vmem:[#allocation4 + $0xc8] sm:$0xff]  ;;  %v1803_v34 = vld [vmem:[#allocation4 + $0x80] sm:$0xff]  ;;  %v1842_v40 = vld [vmem:[#allocation4 + $0x1b8] sm:$0xff]  ;;  %v206_v43 = vpack.c.b16 %v198_v33, %v198_v33  ;;  %v207_v45 = vpack.c.b16 %v199_v37, %v199_v37 }
  0x18   :  { %647 = vmatpush.bf16.msra.mxu3 %v1816_v11  ;;  %v59_v28 = vld [vmem:[%s2094_s0 + $0x8] sm:$0xff]  ;;  %v1850_v41 = vld [vmem:[#allocation4 + $0x1f8] sm:$0xff]  ;;  %v1825_v46 = vld [vmem:[#allocation4 + $0x130] sm:$0xff] }
  0x19   :  { %609 = vmatpush.bf16.msra.mxu0 %v1791_v12  ;;  %v200_v32 = vunpack.c.l.b16 %v59_v28  ;;  %v1811_v35 = vld [vmem:[#allocation4 + $0xc0] sm:$0xff]  ;;  %v201_v36 = vunpack.c.h.b16 %v59_v28  ;;  %v1833_v47 = vld [vmem:[#allocation4 + $0x170] sm:$0xff]  ;;  %v1824_v50 = vld [vmem:[#allocation4 + $0x128] sm:$0xff] }
  0x1a   :  { %622 = vmatpush.bf16.msra.mxu1 %v1799_v13  ;;  %v1841_v48 = vld [vmem:[#allocation4 + $0x1b0] sm:$0xff]  ;;  %v1832_v51 = vld [vmem:[#allocation4 + $0x168] sm:$0xff]  ;;  %v1823_v54 = vld [vmem:[#allocation4 + $0x120] sm:$0xff] }
  0x1b   :  { %635 = vmatpush.bf16.msra.mxu2 %v1807_v14  ;;  %v208_v42 = vpack.c.b16 %v200_v32, %v200_v32  ;;  %v209_v44 = vpack.c.b16 %v201_v36, %v201_v36  ;;  %v1849_v49 = vld [vmem:[#allocation4 + $0x1f0] sm:$0xff]  ;;  %v1840_v52 = vld [vmem:[#allocation4 + $0x1a8] sm:$0xff]  ;;  %v1831_v55 = vld [vmem:[#allocation4 + $0x160] sm:$0xff] }
  0x1c   :  { %648 = vmatpush.bf16.msra.mxu3 %v1815_v15  ;;  %v1848_v53 = vld [vmem:[#allocation4 + $0x1e8] sm:$0xff]  ;;  %v1839_v56 = vld [vmem:[#allocation4 + $0x1a0] sm:$0xff]  ;;  %v1822_v58 = vld [vmem:[#allocation4 + $0x118] sm:$0xff] }
  0x1d   :  { %610 = vmatpush.bf16.msra.mxu0 %v1790_v16  ;;  %v1847_v57 = vld [vmem:[#allocation4 + $0x1e0] sm:$0xff]  ;;  %v1830_v59 = vld [vmem:[#allocation4 + $0x158] sm:$0xff]  ;;  %v1821_v62 = vld [vmem:[#allocation4 + $0x110] sm:$0xff] }
  0x1e   :  { %623 = vmatpush.bf16.msra.mxu1 %v1798_v17  ;;  %v1838_v60 = vld [vmem:[#allocation4 + $0x198] sm:$0xff]  ;;  %v1829_v63 = vld [vmem:[#allocation4 + $0x150] sm:$0xff]  ;;  %v1820_v2 = vld [vmem:[#allocation4 + $0x108] sm:$0xff] }
  0x1f   :  { %636 = vmatpush.bf16.msra.mxu2 %v1806_v18  ;;  %v1846_v61 = vld [vmem:[#allocation4 + $0x1d8] sm:$0xff]  ;;  %v1837_v0 = vld [vmem:[#allocation4 + $0x190] sm:$0xff]  ;;  %v1828_v3 = vld [vmem:[#allocation4 + $0x148] sm:$0xff] }
  0x20   :  { %649 = vmatpush.bf16.msra.mxu3 %v1814_v19  ;;  %v1845_v1 = vld [vmem:[#allocation4 + $0x1d0] sm:$0xff]  ;;  %v1836_v5 = vld [vmem:[#allocation4 + $0x188] sm:$0xff]  ;;  %v1819_v10 = vld [vmem:[#allocation4 + $0x100] sm:$0xff] }
  0x21   :  { %611 = vmatpush.bf16.msra.mxu0 %v1789_v20  ;;  %v60_v4 = vld [vmem:[%s2094_s0 + $0x10] sm:$0xff]  ;;  %v61_v7 = vld [vmem:[%s2094_s0 + $0x18] sm:$0xff]  ;;  %v1827_v11 = vld [vmem:[#allocation4 + $0x140] sm:$0xff] }
  0x22   :  { %624 = vmatpush.bf16.msra.mxu1 %v1797_v21  ;;  %v1844_v6 = vld [vmem:[#allocation4 + $0x1c8] sm:$0xff]  ;;  %v202_v8 = vunpack.c.l.b16 %v60_v4  ;;  %v203_v9 = vunpack.c.h.b16 %v60_v4  ;;  %v204_v12 = vunpack.c.l.b16 %v61_v7  ;;  %v205_v13 = vunpack.c.h.b16 %v61_v7  ;;  %v1835_v14 = vld [vmem:[#allocation4 + $0x180] sm:$0xff] }
  0x23   :  { %637 = vmatpush.bf16.msra.mxu2 %v1805_v22  ;;  %v1843_v15 = vld [vmem:[#allocation4 + $0x1c0] sm:$0xff]  ;;  %v1908_v29 = vld [vmem:[#allocation6 + $0x1cc] sm:$0xf]  ;;  %v1733_v37 = vld [vmem:[#allocation6 + $0x188] sm:$0xf] }
  0x24   :  { %650 = vmatpush.bf16.msra.mxu3 %v1813_v23  ;;  %v210_v16 = vpack.c.b16 %v202_v8, %v202_v8  ;;  %v211_v17 = vpack.c.b16 %v203_v9, %v203_v9  ;;  %v212_v18 = vpack.c.b16 %v204_v12, %v204_v12  ;;  %v213_v19 = vpack.c.b16 %v205_v13, %v205_v13  ;;  %v1757_v20 = vld [vmem:[#allocation6 + $0x1c0] sm:$0xf]  ;;  %v1907_v22 = vld [vmem:[#allocation6 + $0x1c4] sm:$0xf]  ;;  %v1637_v9 = vld [vmem:[#allocation6 + $0xc8] sm:$0xf] }
  0x25   :  { %612 = vmatpush.bf16.msra.mxu0 %v1788_v24  ;;  %v1911_v21 = vld [vmem:[#allocation6 + $0x1dc] sm:$0xf0]  ;;  %v1759_v24 = vld [vmem:[#allocation6 + $0x1e0] sm:$0xf0] }
  0x26   :  { %625 = vmatpush.bf16.msra.mxu1 %v1796_v25  ;;  %v1758_v23 = vor.u32 %v1911_v21, %v1757_v20  ;;  %v1765_v25 = vld [vmem:[#allocation6 + $0x1c8] sm:$0xf]  ;;  %v1725_v32 = vld [vmem:[#allocation6 + $0x180] sm:$0xf]  ;;  %v1727_v36 = vld [vmem:[#allocation6 + $0x1a0] sm:$0xf0] }
  0x27   :  { %638 = vmatpush.bf16.msra.mxu2 %v1804_v26  ;;  %v1912_v26 = vld [vmem:[#allocation6 + $0x1e4] sm:$0xf0]  ;;  %v1903_v33 = vld [vmem:[#allocation6 + $0x19c] sm:$0xf0]  ;;  %v1631_v7 = vld [vmem:[#allocation6 + $0xe0] sm:$0xf0] }
  0x28   :  { %651 = vmatpush.bf16.msra.mxu3 %v1812_v27  ;;  %v1762_v27 = vor.u32 %v1907_v22, %v1759_v24  ;;  %v1766_v28 = vor.u32 %v1912_v26, %v1765_v25  ;;  %v1605_v20 = vld [vmem:[#allocation6 + $0x88] sm:$0xf]  ;;  %v1868_v22 = vld [vmem:[#allocation6 + $0x8c] sm:$0xf] }
  0x29   :  { %613 = vmatpush.bf16.msra.mxu0 %v1787_v30  ;;  %v1767_v30 = vld [vmem:[#allocation6 + $0x1e8] sm:$0xf0]  ;;  %v1872_v21 = vld [vmem:[#allocation6 + $0xa4] sm:$0xf0] }
  0x2a   :  { %626 = vmatpush.bf16.msra.mxu1 %v1795_v31  ;;  %v1770_v31 = vor.u32 %v1908_v29, %v1767_v30  ;;  %v1606_v26 = vor.u32 %v1872_v21, %v1605_v20  ;;  %v1863_v29 = vld [vmem:[#allocation6 + $0x5c] sm:$0xf0]  ;;  %v1859_v30 = vld [vmem:[#allocation6 + $0x44] sm:$0xf]  ;;  %v1897_v20 = vld [vmem:[#allocation6 + $0x16c] sm:$0xf0] }
  0x2b   :  { %639 = vmatpush.bf16.msra.mxu2 %v1803_v34  ;;  %v1899_v34 = vld [vmem:[#allocation6 + $0x184] sm:$0xf]  ;;  %v1893_v21 = vld [vmem:[#allocation6 + $0x154] sm:$0xf] }
  0x2c   :  { %652 = vmatpush.bf16.msra.mxu3 %v1811_v35  ;;  %614 = vmatmul.bf16.vlgmr.msra.gmra.mxu0 %v206_v43  ;;  %v1726_v35 = vor.u32 %v1903_v33, %v1725_v32  ;;  %v1693_v43 = vld [vmem:[#allocation6 + $0x140] sm:$0xf]  ;;  %v1567_v32 = vld [vmem:[#allocation6 + $0x60] sm:$0xf0]  ;;  %v1573_v33 = vld [vmem:[#allocation6 + $0x48] sm:$0xf] }
  0x2d   :  { %658 = vmatpush.bf16.msrb.mxu0 %v1826_v38  ;;  %627 = vmatmul.bf16.vlgmr.msra.gmra.mxu1 %v207_v45  ;;  %v1904_v38 = vld [vmem:[#allocation6 + $0x1a4] sm:$0xf0]  ;;  %v1895_v45 = vld [vmem:[#allocation6 + $0x15c] sm:$0xf0] }
  0x2e   :  { %671 = vmatpush.bf16.msrb.mxu1 %v1834_v39  ;;  %640 = vmatmul.bf16.vlgmr.msra.gmra.mxu2 %v208_v42  ;;  %v1730_v39 = vor.u32 %v1899_v34, %v1727_v36  ;;  %v1735_v42 = vld [vmem:[#allocation6 + $0x1a8] sm:$0xf0]  ;;  %v1864_v34 = vld [vmem:[#allocation6 + $0x64] sm:$0xf0]  ;;  %v1570_v36 = vor.u32 %v1859_v30, %v1567_v32  ;;  %v1677_v30 = vld [vmem:[#allocation6 + $0x110] sm:$0xf] }
  0x2f   :  { %684 = vmatpush.bf16.msrb.mxu2 %v1842_v40  ;;  %653 = vmatmul.bf16.vlgmr.msra.gmra.mxu3 %v209_v44  ;;  %v1734_v40 = vor.u32 %v1904_v38, %v1733_v37  ;;  %v1574_v37 = vor.u32 %v1864_v34, %v1573_v33  ;;  %v1860_v38 = vld [vmem:[#allocation6 + $0x4c] sm:$0xf]  ;;  %v1889_v33 = vld [vmem:[#allocation6 + $0x12c] sm:$0xf0]  ;;  %v1885_v34 = vld [vmem:[#allocation6 + $0x114] sm:$0xf] }
  0x30   :  { %697 = vmatpush.bf16.msrb.mxu3 %v1850_v41  ;;  %v1900_v41 = vld [vmem:[#allocation6 + $0x18c] sm:$0xf] }
  0x31   :  { %659 = vmatpush.bf16.msrb.mxu0 %v1825_v46  ;;  %v1738_v44 = vor.u32 %v1900_v41, %v1735_v42  ;;  %v1891_v46 = vld [vmem:[#allocation6 + $0x144] sm:$0xf]  ;;  %v1533_v42 = vld [vmem:[#allocation6] sm:$0xf] }
  0x32   :  { %672 = vmatpush.bf16.msrb.mxu1 %v1833_v47  ;;  %v1695_v47 = vld [vmem:[#allocation6 + $0x160] sm:$0xf0] }
  0x33   :  { %685 = vmatpush.bf16.msrb.mxu2 %v1841_v48  ;;  %v1694_v48 = vor.u32 %v1895_v45, %v1693_v43  ;;  %v1855_v43 = vld [vmem:[#allocation6 + $0x1c] sm:$0xf0] }
  0x34   :  { %698 = vmatpush.bf16.msrb.mxu3 %v1849_v49  ;;  %v1698_v49 = vor.u32 %v1891_v46, %v1695_v47  ;;  %v1534_v45 = vor.u32 %v1855_v43, %v1533_v42  ;;  %v1535_v46 = vld [vmem:[#allocation6 + $0x20] sm:$0xf0]  ;;  %v1541_v47 = vld [vmem:[#allocation6 + $0x8] sm:$0xf]  ;;  %v1678_v42 = vor.u32 %v1889_v33, %v1677_v30 }
  0x35   :  { %660 = vmatpush.bf16.msrb.mxu0 %v1824_v50  ;;  %v1701_v50 = vld [vmem:[#allocation6 + $0x148] sm:$0xf] }
  0x36   :  { %673 = vmatpush.bf16.msrb.mxu1 %v1832_v51  ;;  %v1896_v51 = vld [vmem:[#allocation6 + $0x164] sm:$0xf0] }
  0x37   :  { %686 = vmatpush.bf16.msrb.mxu2 %v1840_v52  ;;  %v1892_v52 = vld [vmem:[#allocation6 + $0x14c] sm:$0xf] }
  0x38   :  { %699 = vmatpush.bf16.msrb.mxu3 %v1848_v53  ;;  %v1702_v53 = vor.u32 %v1896_v51, %v1701_v50  ;;  %v1852_v51 = vld [vmem:[#allocation6 + $0xc] sm:$0xf] }
  0x39   :  { %661 = vmatpush.bf16.msrb.mxu0 %v1823_v54  ;;  %v1703_v54 = vld [vmem:[#allocation6 + $0x168] sm:$0xf0] }
  0x3a   :  { %674 = vmatpush.bf16.msrb.mxu1 %v1831_v55  ;;  %v1706_v55 = vor.u32 %v1892_v52, %v1703_v54  ;;  %v1543_v52 = vld [vmem:[#allocation6 + $0x28] sm:$0xf0] }
  0x3b   :  { %687 = vmatpush.bf16.msrb.mxu2 %v1839_v56  ;;  %v1661_v56 = vld [vmem:[#allocation6 + $0x100] sm:$0xf]  ;;  %v1546_v54 = vor.u32 %v1852_v51, %v1543_v52 }
  0x3c   :  { %700 = vmatpush.bf16.msrb.mxu3 %v1847_v57  ;;  %v1887_v57 = vld [vmem:[#allocation6 + $0x11c] sm:$0xf0] }
  0x3d   :  { %662 = vmatpush.bf16.msrb.mxu0 %v1822_v58  ;;  %v1883_v58 = vld [vmem:[#allocation6 + $0x104] sm:$0xf] }
  0x3e   :  { %675 = vmatpush.bf16.msrb.mxu1 %v1830_v59  ;;  %v1662_v59 = vor.u32 %v1887_v57, %v1661_v56  ;;  %v1909_v56 = vld [vmem:[#allocation6 + $0x1d4] sm:$0xf] }
  0x3f   :  { %688 = vmatpush.bf16.msrb.mxu2 %v1838_v60  ;;  %v1663_v60 = vld [vmem:[#allocation6 + $0x120] sm:$0xf0]  ;;  %v1775_v57 = vld [vmem:[#allocation6 + $0x1f0] sm:$0xf0] }
  0x40   :  { %701 = vmatpush.bf16.msrb.mxu3 %v1846_v61  ;;  %v1669_v61 = vld [vmem:[#allocation6 + $0x108] sm:$0xf] }
  0x41   :  { %663 = vmatpush.bf16.msrb.mxu0 %v1821_v62  ;;  %v1888_v62 = vld [vmem:[#allocation6 + $0x124] sm:$0xf0] }
  0x42   :  { %676 = vmatpush.bf16.msrb.mxu1 %v1829_v63  ;;  %v1666_v63 = vor.u32 %v1883_v58, %v1663_v60  ;;  %v1778_v60 = vor.u32 %v1909_v56, %v1775_v57 }
  0x43   :  { %689 = vmatpush.bf16.msrb.mxu2 %v1837_v0  ;;  %v1670_v0 = vor.u32 %v1888_v62, %v1669_v61  ;;  %v1781_v61 = vld [vmem:[#allocation6 + $0x1d8] sm:$0xf] }
  0x44   :  { %702 = vmatpush.bf16.msrb.mxu3 %v1845_v1  ;;  %v1884_v1 = vld [vmem:[#allocation6 + $0x10c] sm:$0xf]  ;;  %v1914_v62 = vld [vmem:[#allocation6 + $0x1f4] sm:$0xf0] }
  0x45   :  { %664 = vmatpush.bf16.msrb.mxu0 %v1820_v2  ;;  %v1671_v2 = vld [vmem:[#allocation6 + $0x128] sm:$0xf0] }
  0x46   :  { %677 = vmatpush.bf16.msrb.mxu1 %v1828_v3  ;;  %v1629_v3 = vld [vmem:[#allocation6 + $0xc0] sm:$0xf]  ;;  %v1674_v4 = vor.u32 %v1884_v1, %v1671_v2  ;;  %v1782_v1 = vor.u32 %v1914_v62, %v1781_v61  ;;  %v1783_v2 = vld [vmem:[#allocation6 + $0x1f8] sm:$0xf0]  ;;  %v1873_v62 = vld [vmem:[#allocation6 + $0xac] sm:$0xf0] }
  0x47   :  { %690 = vmatpush.bf16.msrb.mxu2 %v1836_v5  ;;  %v1879_v5 = vld [vmem:[#allocation6 + $0xdc] sm:$0xf0] }
  0x48   :  { %703 = vmatpush.bf16.msrb.mxu3 %v1844_v6  ;;  %v1875_v6 = vld [vmem:[#allocation6 + $0xc4] sm:$0xf]  ;;  %v1630_v8 = vor.u32 %v1879_v5, %v1629_v3  ;;  %v1741_v3 = vld [vmem:[#allocation6 + $0x190] sm:$0xf] }
  0x49   :  { %665 = vmatpush.bf16.msrb.mxu0 %v1819_v10  ;;  %v1880_v10 = vld [vmem:[#allocation6 + $0xe4] sm:$0xf0]  ;;  %v1634_v12 = vor.u32 %v1875_v6, %v1631_v7 }
  0x4a   :  { %678 = vmatpush.bf16.msrb.mxu1 %v1827_v11  ;;  %v1876_v11 = vld [vmem:[#allocation6 + $0xcc] sm:$0xf]  ;;  %v1638_v13 = vor.u32 %v1880_v10, %v1637_v9  ;;  %v1743_v9 = vld [vmem:[#allocation6 + $0x1b0] sm:$0xf0]  ;;  %v1749_v10 = vld [vmem:[#allocation6 + $0x198] sm:$0xf] }
  0x4b   :  { %691 = vmatpush.bf16.msrb.mxu2 %v1835_v14  ;;  %v1639_v14 = vld [vmem:[#allocation6 + $0xe8] sm:$0xf0] }
  0x4c   :  { %704 = vmatpush.bf16.msrb.mxu3 %v1843_v15  ;;  %666 = vmatmul.bf16.vlgmr.msrb.gmra.mxu0 %v210_v16  ;;  %v1597_v15 = vld [vmem:[#allocation6 + $0x80] sm:$0xf] }
  0x4d   :  { %679 = vmatmul.bf16.vlgmr.msrb.gmra.mxu1 %v211_v17  ;;  %1121 = vmatpush.bf16.msra.mxu0 %v1758_v23  ;;  %v1871_v16 = vld [vmem:[#allocation6 + $0x9c] sm:$0xf0]  ;;  %v1642_v17 = vor.u32 %v1876_v11, %v1639_v14  ;;  %v1607_v23 = vld [vmem:[#allocation6 + $0xa8] sm:$0xf0]  ;;  %v1902_v14 = vld [vmem:[#allocation6 + $0x19c] sm:$0xf] }
  0x4e   :  { %692 = vmatmul.bf16.vlgmr.msrb.gmra.mxu2 %v212_v18  ;;  %1134 = vmatpush.bf16.msra.mxu1 %v1762_v27  ;;  %v1867_v18 = vld [vmem:[#allocation6 + $0x84] sm:$0xf]  ;;  %v1598_v24 = vor.u32 %v1871_v16, %v1597_v15  ;;  %v1610_v27 = vor.u32 %v1868_v22, %v1607_v23  ;;  %v1751_v15 = vld [vmem:[#allocation6 + $0x1b8] sm:$0xf0]  ;;  %v1711_v23 = vld [vmem:[#allocation6 + $0x170] sm:$0xf0] }
  0x4f   :  { %705 = vmatmul.bf16.vlgmr.msrb.gmra.mxu3 %v213_v19  ;;  %1147 = vmatpush.bf16.msra.mxu2 %v1766_v28  ;;  %v1599_v19 = vld [vmem:[#allocation6 + $0xa0] sm:$0xf0]  ;;  %v1565_v28 = vld [vmem:[#allocation6 + $0x40] sm:$0xf] }
  0x50   :  { %1160 = vmatpush.bf16.msra.mxu3 %v1770_v31  ;;  %v1602_v25 = vor.u32 %v1867_v18, %v1599_v19  ;;  %v1566_v31 = vor.u32 %v1863_v29, %v1565_v28  ;;  %v1921_v18 = vld [vmem:[%s2096_s2] ss:$0 sm:$0xff]  ;;  %v1709_v19 = vld [vmem:[#allocation6 + $0x150] sm:$0xf] }
  0x51   :  { %1122 = vmatpush.bf16.msra.mxu0 %v1726_v35  ;;  %v1710_v22 = vor.u32 %v1897_v20, %v1709_v19  ;;  %v1894_v28 = vld [vmem:[#allocation6 + $0x15c] sm:$0xf]  ;;  %v1549_v20 = vld [vmem:[#allocation6 + $0x10] sm:$0xf] }
  0x52   :  { %1135 = vmatpush.bf16.msra.mxu1 %v1730_v39  ;;  %v1575_v39 = vld [vmem:[#allocation6 + $0x68] sm:$0xf0]  ;;  %v1719_v29 = vld [vmem:[#allocation6 + $0x178] sm:$0xf0] }
  0x53   :  { %1148 = vmatpush.bf16.msra.mxu2 %v1734_v40  ;;  %v1578_v41 = vor.u32 %v1860_v38, %v1575_v39  ;;  %v1722_v32 = vor.u32 %v1894_v28, %v1719_v29  ;;  %v1685_v38 = vld [vmem:[#allocation6 + $0x118] sm:$0xf] }
  0x54   :  { %1161 = vmatpush.bf16.msra.mxu3 %v1738_v44  ;;  %v1851_v44 = vld [vmem:[#allocation6 + $0x4] sm:$0xf]  ;;  %v1890_v39 = vld [vmem:[#allocation6 + $0x134] sm:$0xf0] }
  0x55   :  { %1123 = vmatpush.bf16.msra.mxu0 %v1694_v48  ;;  %v1856_v48 = vld [vmem:[#allocation6 + $0x24] sm:$0xf0]  ;;  %v1557_v28 = vld [vmem:[#allocation6 + $0x18] sm:$0xf] }
  0x56   :  { %1136 = vmatpush.bf16.msra.mxu1 %v1698_v49  ;;  %v1538_v49 = vor.u32 %v1851_v44, %v1535_v46  ;;  %v1542_v50 = vor.u32 %v1856_v48, %v1541_v47  ;;  %v1687_v44 = vld [vmem:[#allocation6 + $0x138] sm:$0xf0]  ;;  %v1686_v46 = vor.u32 %v1890_v39, %v1685_v38  ;;  %v1645_v48 = vld [vmem:[#allocation6 + $0xd0] sm:$0xf]  ;;  %v1858_v29 = vld [vmem:[#allocation6 + $0x34] sm:$0xf0] }
  0x57   :  { %1149 = vmatpush.bf16.msra.mxu2 %v1702_v53  ;;  %v1773_v53 = vld [vmem:[#allocation6 + $0x1d0] sm:$0xf] }
  0x58   :  { %1162 = vmatpush.bf16.msra.mxu3 %v1706_v55  ;;  %v1913_v55 = vld [vmem:[#allocation6 + $0x1ec] sm:$0xf0] }
  0x59   :  { %1124 = vmatpush.bf16.msra.mxu0 %v1662_v59  ;;  %v1774_v59 = vor.u32 %v1913_v55, %v1773_v53  ;;  %v1647_v53 = vld [vmem:[#allocation6 + $0xf0] sm:$0xf0]  ;;  %v1882_v55 = vld [vmem:[#allocation6 + $0xf4] sm:$0xf0] }
  0x5a   :  { %1137 = vmatpush.bf16.msra.mxu1 %v1666_v63  ;;  %v1910_v63 = vld [vmem:[#allocation6 + $0x1dc] sm:$0xf] }
  0x5b   :  { %1150 = vmatpush.bf16.msra.mxu2 %v1670_v0  ;;  %v1786_v6 = vor.u32 %v1910_v63, %v1783_v2  ;;  %v1869_v63 = vld [vmem:[#allocation6 + $0x94] sm:$0xf] }
  0x5c   :  { %1163 = vmatpush.bf16.msra.mxu3 %v1674_v4  ;;  %v1905_v4 = vld [vmem:[#allocation6 + $0x1ac] sm:$0xf0] }
  0x5d   :  { %1125 = vmatpush.bf16.msra.mxu0 %v1630_v8  ;;  %v1742_v7 = vor.u32 %v1905_v4, %v1741_v3  ;;  %v1901_v8 = vld [vmem:[#allocation6 + $0x194] sm:$0xf]  ;;  %v1874_v4 = vld [vmem:[#allocation6 + $0xb4] sm:$0xf0] }
  0x5e   :  { %1138 = vmatpush.bf16.msra.mxu1 %v1634_v12  ;;  %v1746_v12 = vor.u32 %v1901_v8, %v1743_v9  ;;  %v1623_v8 = vld [vmem:[#allocation6 + $0xb8] sm:$0xf0]  ;;  %v1581_v9 = vld [vmem:[#allocation6 + $0x50] sm:$0xf] }
  0x5f   :  { %1151 = vmatpush.bf16.msra.mxu2 %v1638_v13  ;;  %v1906_v13 = vld [vmem:[#allocation6 + $0x1b4] sm:$0xf0] }
  0x60   :  { %1164 = vmatpush.bf16.msra.mxu3 %v1642_v17  ;;  %v1750_v16 = vor.u32 %v1906_v13, %v1749_v10  ;;  %v1754_v17 = vor.u32 %v1902_v14, %v1751_v15  ;;  %v1865_v10 = vld [vmem:[#allocation6 + $0x6c] sm:$0xf0]  ;;  %v1583_v13 = vld [vmem:[#allocation6 + $0x70] sm:$0xf0]  ;;  %v1589_v14 = vld [vmem:[#allocation6 + $0x58] sm:$0xf] }
  0x61   :  { %1126 = vmatpush.bf16.msra.mxu0 %v1598_v24  ;;  %v1717_v24 = vld [vmem:[#allocation6 + $0x158] sm:$0xf] }
  0x62   :  { %1139 = vmatpush.bf16.msra.mxu1 %v1602_v25  ;;  %v1898_v25 = vld [vmem:[#allocation6 + $0x174] sm:$0xf0] }
  0x63   :  { %1152 = vmatpush.bf16.msra.mxu2 %v1606_v26  ;;  %v1714_v26 = vor.u32 %v1893_v21, %v1711_v23  ;;  %v1866_v15 = vld [vmem:[#allocation6 + $0x74] sm:$0xf0] }
  0x64   :  { %1165 = vmatpush.bf16.msra.mxu3 %v1610_v27  ;;  %v1718_v27 = vor.u32 %v1898_v25, %v1717_v24  ;;  %v1590_v23 = vor.u32 %v1866_v15, %v1589_v14  ;;  %v1857_v24 = vld [vmem:[#allocation6 + $0x2c] sm:$0xf0]  ;;  %v1853_v25 = vld [vmem:[#allocation6 + $0x14] sm:$0xf] }
  0x65   :  { %1127 = vmatpush.bf16.msra.mxu0 %v1566_v31  ;;  %v1550_v33 = vor.u32 %v1857_v24, %v1549_v20 }
  0x66   :  { %1140 = vmatpush.bf16.msra.mxu1 %v1570_v36  ;;  %v1679_v36 = vld [vmem:[#allocation6 + $0x130] sm:$0xf0] }
  0x67   :  { %1153 = vmatpush.bf16.msra.mxu2 %v1574_v37  ;;  %v1682_v43 = vor.u32 %v1885_v34, %v1679_v36 }
  0x68   :  { %1166 = vmatpush.bf16.msra.mxu3 %v1578_v41  ;;  %v1886_v41 = vld [vmem:[#allocation6 + $0x11c] sm:$0xf] }
  0x69   :  { %1128 = vmatpush.bf16.msra.mxu0 %v1534_v45  ;;  %v1690_v47 = vor.u32 %v1886_v41, %v1687_v44 }
  0x6a   :  { %1141 = vmatpush.bf16.msra.mxu1 %v1538_v49  ;;  %v1881_v49 = vld [vmem:[#allocation6 + $0xec] sm:$0xf0] }
  0x6b   :  { %1154 = vmatpush.bf16.msra.mxu2 %v1542_v50  ;;  %v1877_v50 = vld [vmem:[#allocation6 + $0xd4] sm:$0xf]  ;;  %v1646_v52 = vor.u32 %v1881_v49, %v1645_v48 }
  0x6c   :  { %1167 = vmatpush.bf16.msra.mxu3 %v1546_v54  ;;  %v1653_v54 = vld [vmem:[#allocation6 + $0xd8] sm:$0xf]  ;;  %v1650_v56 = vor.u32 %v1877_v50, %v1647_v53  ;;  %v783_v50 = vld [vmem:[%s2098_s4] sm:$0xff] }
  0x6d   :  { %1173 = vmatpush.bf16.msrb.mxu0 %v1774_v59  ;;  %v1654_v57 = vor.u32 %v1882_v55, %v1653_v54  ;;  %v1655_v59 = vld [vmem:[#allocation6 + $0xf8] sm:$0xf0]  ;;  %v791_v24 = vperm.slane %v783_v50, 6 }
  0x6e   :  { %1186 = vmatpush.bf16.msrb.mxu1 %v1778_v60  ;;  %v1613_v60 = vld [vmem:[#allocation6 + $0x90] sm:$0xf] }
  0x6f   :  { %1199 = vmatpush.bf16.msrb.mxu2 %v1782_v1  ;;  %v1615_v1 = vld [vmem:[#allocation6 + $0xb0] sm:$0xf0]  ;;  %v1614_v2 = vor.u32 %v1873_v62, %v1613_v60  ;;  %v788_v60 = vperm.slane %v783_v50, 3 }
  0x70   :  { %1212 = vmatpush.bf16.msrb.mxu3 %v1786_v6  ;;  %v1618_v3 = vor.u32 %v1869_v63, %v1615_v1 }
  0x71   :  { %1174 = vmatpush.bf16.msrb.mxu0 %v1742_v7 }
  0x72   :  { %1187 = vmatpush.bf16.msrb.mxu1 %v1746_v12  ;;  %v1861_v12 = vld [vmem:[#allocation6 + $0x54] sm:$0xf] }
  0x73   :  { %1200 = vmatpush.bf16.msrb.mxu2 %v1750_v16  ;;  %v1862_v16 = vld [vmem:[#allocation6 + $0x5c] sm:$0xf]  ;;  %v1586_v19 = vor.u32 %v1861_v12, %v1583_v13 }
  0x74   :  { %1213 = vmatpush.bf16.msrb.mxu3 %v1754_v17  ;;  %v1591_v17 = vld [vmem:[#allocation6 + $0x78] sm:$0xf0] }
  0x75   :  { %1175 = vmatpush.bf16.msrb.mxu0 %v1710_v22 }
  0x76   :  { %1188 = vmatpush.bf16.msrb.mxu1 %v1714_v26  ;;  %v1551_v26 = vld [vmem:[#allocation6 + $0x30] sm:$0xf0] }
  0x77   :  { %1201 = vmatpush.bf16.msrb.mxu2 %v1718_v27  ;;  %v1594_v27 = vor.u32 %v1862_v16, %v1591_v17  ;;  %v1554_v34 = vor.u32 %v1853_v25, %v1551_v26  ;;  %v792_v25 = vperm.slane %v783_v50, 7 }
  0x78   :  { %1214 = vmatpush.bf16.msrb.mxu3 %v1722_v32  ;;  %v1559_v32 = vld [vmem:[#allocation6 + $0x38] sm:$0xf0] }
  0x79   :  { %1176 = vmatpush.bf16.msrb.mxu0 %v1678_v42 }
  0x7a   :  { %1189 = vmatpush.bf16.msrb.mxu1 %v1682_v43 }
  0x7b   :  { %1202 = vmatpush.bf16.msrb.mxu2 %v1686_v46 }
  0x7c   :  { %1215 = vmatpush.bf16.msrb.mxu3 %v1690_v47 }
  0x7d   :  { %1177 = vmatpush.bf16.msrb.mxu0 %v1646_v52  ;;  %v786_v52 = vperm.slane %v783_v50, 1 }
  0x7e   :  { %1190 = vmatpush.bf16.msrb.mxu1 %v1650_v56 }
  0x7f   :  { %1203 = vmatpush.bf16.msrb.mxu2 %v1654_v57 }
  0x81   :  { %1178 = vmatpush.bf16.msrb.mxu0 %v1614_v2 }
  0x82   :  { %1191 = vmatpush.bf16.msrb.mxu1 %v1618_v3 }
  0x86   :  { %1192 = vmatpush.bf16.msrb.mxu1 %v1586_v19 }
  0x8a   :  { %1193 = vmatpush.bf16.msrb.mxu1 %v1554_v34 }
  0xa9   :  { %v2049_v35 = vpop.f32.mrf.mxu0 }
  0xaa   :  { %v2051_v40 = vpop.f32.mrf.mxu1  ;;  %v616_v45 = vadd.f32 %v1921_v18, %v2049_v35  ;;  %v1878_v35 = vld [vmem:[#allocation6 + $0xdc] sm:$0xf]  ;;  %v1582_v18 = vor.u32 %v1865_v10, %v1581_v9  ;;  %v789_v9 = vperm.slane %v783_v50, 4  ;;  %v790_v10 = vperm.slane %v783_v50, 5 }
  0xab   :  { %v1658_v61 = vor.u32 %v1878_v35, %v1655_v59  ;;  %v787_v59 = vperm.slane %v783_v50, 2 }
  0xac   :  { %v629_v51 = vadd.f32 %v2051_v40, %v616_v45  ;;  %v1621_v40 = vld [vmem:[#allocation6 + $0x98] sm:$0xf]  ;;  %1179 = vmatpush.bf16.msrb.mxu0 %v1582_v18 }
  0xad   :  { %v1622_v7 = vor.u32 %v1874_v4, %v1621_v40  ;;  %1216 = vmatpush.bf16.msrb.mxu3 %v1658_v61 }
  0xaf   :  { %1204 = vmatpush.bf16.msrb.mxu2 %v1622_v7 }
  0xb0   :  { %1180 = vmatpush.bf16.msrb.mxu0 %v1550_v33 }
  0xb1   :  { %v2053_v58 = vpop.f32.mrf.mxu2  ;;  %v617_v5 = vpop.f32.mrf.mxu0 }
  0xb2   :  { %v2055_v0 = vpop.f32.mrf.mxu3  ;;  %v630_v11 = vpop.f32.mrf.mxu1  ;;  %v1870_v5 = vld [vmem:[#allocation6 + $0x9c] sm:$0xf]  ;;  %v642_v6 = vadd.f32 %v2053_v58, %v629_v51  ;;  %v785_v51 = vperm.slane %v783_v50, 0 }
  0xb3   :  { %v1626_v11 = vor.u32 %v1870_v5, %v1623_v8  ;;  %1205 = vmatpush.bf16.msrb.mxu2 %v1590_v23 }
  0xb4   :  { %v655_v58 = vadd.f32 %v2055_v0, %v642_v6  ;;  %v1558_v0 = vor.u32 %v1858_v29, %v1557_v28 }
  0xb5   :  { %1217 = vmatpush.bf16.msrb.mxu3 %v1626_v11 }
  0xb7   :  { %1206 = vmatpush.bf16.msrb.mxu2 %v1558_v0 }
  0xb9   :  { %v643_v31 = vpop.f32.mrf.mxu2  ;;  %1218 = vmatpush.bf16.msrb.mxu3 %v1594_v27 }
  0xba   :  { %v656_v37 = vpop.f32.mrf.mxu3  ;;  %v1854_v31 = vld [vmem:[#allocation6 + $0x1c] sm:$0xf] }
  0xbb   :  { %v1562_v36 = vor.u32 %v1854_v31, %v1559_v32 }
  0xbd   :  { %1219 = vmatpush.bf16.msrb.mxu3 %v1562_v36 }
  0xc9   :  { %v667_v21 = vpop.f32.mrf.mxu0 }
  0xca   :  { %v680_v22 = vpop.f32.mrf.mxu1  ;;  %v668_v30 = vadd.f32 %v667_v21, %v655_v58 }
  0xcc   :  { %v681_v37 = vadd.f32 %v680_v22, %v668_v30 }
  0xd1   :  { %v693_v38 = vpop.f32.mrf.mxu2  ;;  %v669_v42 = vpop.f32.mrf.mxu0 }
  0xd2   :  { %v706_v39 = vpop.f32.mrf.mxu3  ;;  %v694_v41 = vadd.f32 %v693_v38, %v681_v37  ;;  %v682_v43 = vpop.f32.mrf.mxu1 }
  0xd4   :  { %v707_v44 = vadd.f32 %v706_v39, %v694_v41 }
  0xd6   :  { %v710_v45 = vmax.f32 %v707_v44, 0.0 }
  0xd8   :  { %v711_v46 = vpack.c.bf16 %v710_v45, %v710_v45  ;;  %713 = vst [vmem:[%s2099_s5] sm:$0xff] %v710_v45 }
  0xd9   :  { %v695_v47 = vpop.f32.mrf.mxu2 }
  0xda   :  { %v708_v48 = vpop.f32.mrf.mxu3  ;;  %712 = vst [vmem:[#allocation3] sm:$0xf] %v711_v46 }
  0xe1   :  { %v718_v49 = vld [vmem:[#allocation3] sm:$0xf] }
  0xe2   :  { %1129 = vmatmul.bf16.vlgmr.msra.gmra.mxu0 %v718_v49  ;;  %1142 = vmatmul.bf16.vlgmr.msra.gmra.mxu1 %v718_v49 }
  0xe3   :  { %1155 = vmatmul.bf16.vlgmr.msra.gmra.mxu2 %v718_v49  ;;  %1168 = vmatmul.bf16.vlgmr.msra.gmra.mxu3 %v718_v49 }
  0xf2   :  { %1181 = vmatmul.bf16.vlgmr.msrb.gmra.mxu0 %v718_v49  ;;  %1194 = vmatmul.bf16.vlgmr.msrb.gmra.mxu1 %v718_v49 }
  0xf3   :  { %1207 = vmatmul.bf16.vlgmr.msrb.gmra.mxu2 %v718_v49  ;;  %1220 = vmatmul.bf16.vlgmr.msrb.gmra.mxu3 %v718_v49 }
 0x15f   :  { %v1130_v53 = vpop.f32.mrf.mxu0  ;;  %v1143_v54 = vpop.f32.mrf.mxu1 }
 0x160   :  { %v1131_v55 = vadd.f32 %v1130_v53, %v785_v51  ;;  %v1144_v56 = vadd.f32 %v1143_v54, %v786_v52 }
 0x162   :  { %v1225_v57 = vmul.f32 0.5, %v1131_v55  ;;  %v1226_v35 = vmul.f32 0.5, %v1144_v56 }
 0x164   :  { %1922 = vtanh.f32 %v1225_v57 }
 0x165   :  { %1924 = vtanh.f32 %v1226_v35 }
 0x166   :  { %v1156_v61 = vpop.f32.mrf.mxu2  ;;  %v1169_v62 = vpop.f32.mrf.mxu3 }
 0x167   :  { %v1157_v63 = vadd.f32 %v1156_v61, %v787_v59  ;;  %v1170_v1 = vadd.f32 %v1169_v62, %v788_v60  ;;  %v1132_v2 = vpop.f32.mrf.mxu0  ;;  %v1145_v3 = vpop.f32.mrf.mxu1 }
 0x169   :  { %v1227_v40 = vmul.f32 0.5, %v1157_v63  ;;  %v1228_v4 = vmul.f32 0.5, %v1170_v1 }
 0x16a   :  { %v1923_v5 = vpop.eup %1922 }
 0x16b   :  { %v1925_v6 = vpop.eup %1924  ;;  %v1241_v7 = vmul.f32 0.5, %v1923_v5  ;;  %1926 = vtanh.f32 %v1227_v40 }
 0x16c   :  { %v1242_v8 = vmul.f32 0.5, %v1925_v6  ;;  %1928 = vtanh.f32 %v1228_v4 }
 0x16d   :  { %v1249_v11 = vadd.f32 0.5, %v1241_v7 }
 0x16e   :  { %v1250_v12 = vadd.f32 0.5, %v1242_v8  ;;  %v1158_v13 = vpop.f32.mrf.mxu2  ;;  %v1171_v14 = vpop.f32.mrf.mxu3 }
 0x16f   :  { %1257 = vst [vmem:[%s2100_s6] sm:$0xff] %v1249_v11  ;;  %v1182_v15 = vpop.f32.mrf.mxu0  ;;  %v1195_v16 = vpop.f32.mrf.mxu1 }
 0x170   :  { %1258 = vst [vmem:[%s2100_s6 + $0x8] sm:$0xff] %v1250_v12  ;;  %v1183_v17 = vadd.f32 %v1182_v15, %v789_v9  ;;  %v1196_v18 = vadd.f32 %v1195_v16, %v790_v10 }
 0x171   :  { %v1927_v19 = vpop.eup %1926 }
 0x172   :  { %v1929_v20 = vpop.eup %1928  ;;  %v1243_v58 = vmul.f32 0.5, %v1927_v19  ;;  %v1229_v21 = vmul.f32 0.5, %v1183_v17  ;;  %v1230_v22 = vmul.f32 0.5, %v1196_v18 }
 0x173   :  { %v1244_v23 = vmul.f32 0.5, %v1929_v20 }
 0x174   :  { %v1251_v26 = vadd.f32 0.5, %v1243_v58  ;;  %1930 = vtanh.f32 %v1229_v21 }
 0x175   :  { %v1252_v27 = vadd.f32 0.5, %v1244_v23  ;;  %1932 = vtanh.f32 %v1230_v22 }
 0x176   :  { %1259 = vst [vmem:[%s2100_s6 + $0x10] sm:$0xff] %v1251_v26  ;;  %v1208_v28 = vpop.f32.mrf.mxu2  ;;  %v1221_v29 = vpop.f32.mrf.mxu3 }
 0x177   :  { %1260 = vst [vmem:[%s2100_s6 + $0x18] sm:$0xff] %v1252_v27  ;;  %v1209_v30 = vadd.f32 %v1208_v28, %v791_v24  ;;  %v1222_v31 = vadd.f32 %v1221_v29, %v792_v25  ;;  %v1184_v32 = vpop.f32.mrf.mxu0  ;;  %v1197_v33 = vpop.f32.mrf.mxu1 }
 0x179   :  { %v1231_v34 = vmul.f32 0.5, %v1209_v30  ;;  %v1232_v0 = vmul.f32 0.5, %v1222_v31 }
 0x17a   :  { %v1931_v36 = vpop.eup %1930 }
 0x17b   :  { %v1933_v37 = vpop.eup %1932  ;;  %v1245_v38 = vmul.f32 0.5, %v1931_v36  ;;  %1934 = vtanh.f32 %v1231_v34 }
 0x17c   :  { %v1246_v39 = vmul.f32 0.5, %v1933_v37  ;;  %1936 = vtanh.f32 %v1232_v0 }
 0x17d   :  { %v1253_v41 = vadd.f32 0.5, %v1245_v38 }
 0x17e   :  { %v1254_v42 = vadd.f32 0.5, %v1246_v39  ;;  %v1210_v43 = vpop.f32.mrf.mxu2  ;;  %v1223_v44 = vpop.f32.mrf.mxu3 }
 0x17f   :  { %1261 = vst [vmem:[%s2100_s6 + $0x20] sm:$0xff] %v1253_v41 }
 0x180   :  { %1262 = vst [vmem:[%s2100_s6 + $0x28] sm:$0xff] %v1254_v42 }
 0x181   :  { %v1935_v45 = vpop.eup %1934 }
 0x182   :  { %v1937_v46 = vpop.eup %1936  ;;  %v1247_v47 = vmul.f32 0.5, %v1935_v45 }
 0x183   :  { %v1248_v48 = vmul.f32 0.5, %v1937_v46 }
 0x184   :  { %v1255_v49 = vadd.f32 0.5, %v1247_v47 }
 0x185   :  { %v1256_v50 = vadd.f32 0.5, %v1248_v48 }
 0x186   :  { %1263 = vst [vmem:[%s2100_s6 + $0x30] sm:$0xff] %v1255_v49 }
 0x187   :  { %1264 = vst [vmem:[%s2100_s6 + $0x38] sm:$0xff] %v1256_v50 }
 0x188   :  { %1273 = vsyncpa [#allocation5], 1 }
 0x189   :  { %1274 = vsyncpa [#allocation7], 1 }

</bundles_post_ra>
